<compile_context>
chip_gen: v7x
topology: tpu7x:2x2x1
jax: 0.10.0
libtpu: 0.0.40
codegen_flags: <defaults>
</compile_context>

<pallas_src>
import functools

import numpy as np
import jax
import jax.numpy as jnp
from jax import lax
from jax.experimental import pallas as pl
from jax.experimental.pallas import tpu as pltpu


# ---------------------------------------------------------------------------
# Block-wise scaling helpers (match the PyTorch reference).
# ---------------------------------------------------------------------------
def make_divisible(v, divisor=8, min_value=None):
    if min_value is None:
        min_value = divisor
    new_v = max(min_value, int(v + divisor / 2) // divisor * divisor)
    if new_v < 0.9 * v:
        new_v += divisor
    return new_v


def compute_heads(model_dim, head_dim):
    assert model_dim % head_dim == 0
    return model_dim // head_dim


# ---------------------------------------------------------------------------
# In-kernel math helpers / sizing helpers
# ---------------------------------------------------------------------------
def _layernorm(x, g, b, eps=1e-5):
    # PyTorch nn.LayerNorm: biased variance, eps inside sqrt.
    mu = jnp.mean(x, axis=-1, keepdims=True)
    var = jnp.mean(jnp.square(x - mu), axis=-1, keepdims=True)
    return (x - mu) * lax.rsqrt(var + eps) * g + b


def _vmem_capacity():
    cap = 128 * 2 ** 20
    try:
        info = pltpu.get_tpu_info()
        cap = int(getattr(info, "vmem_capacity_bytes", cap) or cap)
    except Exception:
        pass
    return cap


def _vmem_limit(estimate_bytes, cap):
    hi = int(cap * 0.85)                      # leave headroom for compiler scratch
    want = int(1.5 * estimate_bytes) + (8 << 20)
    return int(max(min(want, hi), min(32 << 20, hi)))


def _pick_tile(n, candidates):
    for t in candidates:
        if n > t and n % t == 0:
            return t
    return n


# ---------------------------------------------------------------------------
# Fused transformer block kernel.
#   grid = (B, T // TQ); batch "parallel", q-tiles "arbitrary" (sequential).
#   Each q-tile computes LN1 + fused QKV for its own rows, appends K/V to
#   per-head VMEM caches, and runs causal online-softmax attention over the
#   k-tiles 0..qi (all already resident thanks to the sequential q axis).
# ---------------------------------------------------------------------------
def transformer_block_kernel(x_ref, ln1g_ref, ln1b_ref, wqkv_ref, wp_ref, bp_ref,
                             ln2g_ref, ln2b_ref, w1_ref, b1_ref, w2_ref, b2_ref,
                             o_ref, q_scr, k_scr, v_scr, ctx_scr,
                             *, num_heads, head_size, q_tile):
    H, hs, TQ = num_heads, head_size, q_tile
    Dq = H * hs
    qi = pl.program_id(1)
    q_start = pl.multiple_of(qi * TQ, TQ)

    xq = x_ref[...]                                               # (TQ, C) f32

    # ---- LN1 + fused QKV for THIS tile's rows; K/V appended to the caches ----
    xn = _layernorm(xq, ln1g_ref[...], ln1b_ref[...])
    qkv = jnp.dot(xn.astype(jnp.bfloat16), wqkv_ref[...],
                  preferred_element_type=jnp.float32).astype(jnp.bfloat16)  # (TQ, 3*Dq)
    for h in range(H):                                            # static unroll over heads
        q_scr[h] = qkv[:, h * hs:(h + 1) * hs]
        k_scr[h, pl.ds(q_start, TQ), :] = qkv[:, Dq + h * hs:Dq + (h + 1) * hs]
        v_scr[h, pl.ds(q_start, TQ), :] = qkv[:, 2 * Dq + h * hs:2 * Dq + (h + 1) * hs]

    qh = q_scr[...]                                               # (H, TQ, hs) bf16 (q pre-scaled)
    rows = q_start + lax.broadcasted_iota(jnp.int32, (TQ, TQ), 0)

    # ---- causal online-softmax over k-tiles 0..qi ----
    def kv_step(ki, carry):
        m, l, acc = carry
        k0 = pl.multiple_of(ki * TQ, TQ)
        kh = k_scr[:, pl.ds(k0, TQ), :]                           # (H, TQ, hs) bf16
        vh = v_scr[:, pl.ds(k0, TQ), :]
        s = jnp.einsum('hqd,hkd->hqk', qh, kh,
                       preferred_element_type=jnp.float32)        # (H, TQ, TQ) f32
        cols = k0 + lax.broadcasted_iota(jnp.int32, (TQ, TQ), 1)
        s = jnp.where((rows >= cols)[None, :, :], s, jnp.float32(-1e30))
        m_new = jnp.maximum(m, jnp.max(s, axis=-1, keepdims=True))
        alpha = jnp.exp(m - m_new)
        p = jnp.exp(s - m_new)
        l_new = alpha * l + jnp.sum(p, axis=-1, keepdims=True)
        acc_new = alpha * acc + jnp.einsum('hqk,hkd->hqd', p.astype(jnp.bfloat16), vh,
                                           preferred_element_type=jnp.float32)
        return m_new, l_new, acc_new

    m0 = jnp.full((H, TQ, 1), -1e30, jnp.float32)
    l0 = jnp.zeros((H, TQ, 1), jnp.float32)
    a0 = jnp.zeros((H, TQ, hs), jnp.float32)
    _, l, acc = lax.fori_loop(0, qi + 1, kv_step, (m0, l0, a0))
    ctx = acc * pl.reciprocal(l, approx=True)                     # (H, TQ, hs) f32

    # gather heads into a lane-contiguous (TQ, Dq) scratch -> single wide matmul
    for h in range(H):
        ctx_scr[:, h * hs:(h + 1) * hs] = ctx[h].astype(jnp.bfloat16)
    sa = jnp.dot(ctx_scr[...], wp_ref[...],
                 preferred_element_type=jnp.float32) + bp_ref[...]
    x1 = xq + sa

    # ---- FFN branch (f32 residual / LN; bf16 MXU operands) ----
    xn2 = _layernorm(x1, ln2g_ref[...], ln2b_ref[...])
    hid = jnp.maximum(
        jnp.dot(xn2.astype(jnp.bfloat16), w1_ref[...],
                preferred_element_type=jnp.float32) + b1_ref[...], 0.0)
    ffn = jnp.dot(hid.astype(jnp.bfloat16), w2_ref[...],
                  preferred_element_type=jnp.float32) + b2_ref[...]

    o_ref[...] = x1 + ffn


def run_block(x, p, *, q_tile=None):
    B, T, C = x.shape
    H, hs = p["num_heads"], p["head_size"]
    Dq = H * hs
    F = p["w1"].shape[1]
    cap = _vmem_capacity()
    if q_tile is None:
        q_tile = _pick_tile(T, (256, 128) if cap >= (96 << 20) else (128,))
    TQ = q_tile
    nQ = T // TQ

    def rep(shape):
        z = (0,) * len(shape)
        return pl.BlockSpec(shape, lambda b, q, _z=z: _z)

    # resident bf16 weights (x2 pipeline buffers) + activation tiles + scratch
    # + in-kernel f32 temporaries (qkv, scores/p, acc, hid, ...).
    wbytes = 2 * 2 * (C * 3 * Dq + Dq * C + C * F + F * C)
    abytes = 2 * 2 * 2 * 4 * (TQ * C)
    sbytes = 2 * (H * TQ * hs + 2 * H * T * hs + TQ * Dq)
    tbytes = 4 * (TQ * 3 * Dq + 2 * TQ * C + TQ * F + 3 * H * TQ * TQ + 3 * H * TQ * hs)
    vmem_limit = _vmem_limit(wbytes + abytes + sbytes + tbytes, cap)

    kernel = functools.partial(transformer_block_kernel,
                               num_heads=H, head_size=hs, q_tile=TQ)
    return pl.pallas_call(
        kernel,
        out_shape=jax.ShapeDtypeStruct((B, T, C), jnp.float32),
        grid=(B, nQ),
        in_specs=[
            pl.BlockSpec((None, TQ, C), lambda b, q: (b, q, 0)),   # x query tile
            rep((1, C)), rep((1, C)),                              # ln1
            rep((C, 3 * Dq)),                                      # fused Wqkv (bf16, q pre-scaled)
            rep((Dq, C)), rep((1, C)),                             # out proj
            rep((1, C)), rep((1, C)),                              # ln2
            rep((C, F)), rep((1, F)),                              # ffn in
            rep((F, C)), rep((1, C)),                              # ffn out
        ],
        out_specs=pl.BlockSpec((None, TQ, C), lambda b, q: (b, q, 0)),
        scratch_shapes=[
            pltpu.VMEM((H, TQ, hs), jnp.bfloat16),   # q (current tile, head-major)
            pltpu.VMEM((H, T, hs), jnp.bfloat16),    # k cache (per batch element)
            pltpu.VMEM((H, T, hs), jnp.bfloat16),    # v cache
            pltpu.VMEM((TQ, Dq), jnp.bfloat16),      # gathered heads for the wide out-proj
        ],
        compiler_params=pltpu.CompilerParams(
            dimension_semantics=("parallel", "arbitrary"),
            vmem_limit_bytes=vmem_limit),
    )(x, p["ln1_g"], p["ln1_b"], p["wqkv"], p["wp"], p["bp"],
      p["ln2_g"], p["ln2_b"], p["w1"], p["b1"], p["w2"], p["b2"])


# ---------------------------------------------------------------------------
# Final LayerNorm (computed ONCE, emitted in bf16 for the lm_head LHS).
# ---------------------------------------------------------------------------
def lnf_kernel(x_ref, g_ref, b_ref, o_ref):
    o_ref[...] = _layernorm(x_ref[...], g_ref[...], b_ref[...]).astype(o_ref.dtype)


def run_lnf(x, kp, *, r_tile=None):
    B, T, C = x.shape
    R = B * T
    xr = x.reshape(R, C)
    cap = _vmem_capacity()
    if r_tile is None:
        r_tile = _pick_tile(R, (1024, 512, 256))
    nR = R // r_tile
    vmem_limit = _vmem_limit(2 * (r_tile * C * 4 + r_tile * C * 2) + 4 * r_tile * C, cap)
    return pl.pallas_call(
        lnf_kernel,
        out_shape=jax.ShapeDtypeStruct((R, C), jnp.bfloat16),
        grid=(nR,),
        in_specs=[pl.BlockSpec((r_tile, C), lambda r: (r, 0)),
                  pl.BlockSpec((1, C), lambda r: (0, 0)),
                  pl.BlockSpec((1, C), lambda r: (0, 0))],
        out_specs=pl.BlockSpec((r_tile, C), lambda r: (r, 0)),
        compiler_params=pltpu.CompilerParams(
            dimension_semantics=("parallel",),
            vmem_limit_bytes=vmem_limit),
    )(xr, kp["lnf_g"], kp["lnf_b"])


# ---------------------------------------------------------------------------
# lm_head: grid = (vocab_tiles, row_tiles), rows innermost so each (C, TV)
# weight tile is fetched from HBM once (not once per batch element).
# ---------------------------------------------------------------------------
def lm_head_kernel(x_ref, w_ref, b_ref, o_ref):
    o_ref[...] = (jnp.dot(x_ref[...], w_ref[...],
                          preferred_element_type=jnp.float32) + b_ref[...])


def run_lm_head(xf, kp, *, r_tile=None, v_tile=None):
    R, C = xf.shape
    V = kp["lm_w"].shape[1]
    cap = _vmem_capacity()
    if v_tile is None:
        cands = (4096, 2048, 1024, 512, 256) if cap >= (96 << 20) else (2048, 1024, 512, 256)
        v_tile = _pick_tile(V, cands)
    if r_tile is None:
        r_tile = _pick_tile(R, (512, 256, 128))
    nV, nR = V // v_tile, R // r_tile
    est = 2 * (r_tile * C * 2 + C * v_tile * 2 + v_tile * 4 + r_tile * v_tile * 4) \
        + 4 * r_tile * v_tile
    vmem_limit = _vmem_limit(est, cap)
    return pl.pallas_call(
        lm_head_kernel,
        out_shape=jax.ShapeDtypeStruct((R, V), jnp.float32),
        grid=(nV, nR),
        in_specs=[
            pl.BlockSpec((r_tile, C), lambda v, r: (r, 0)),      # bf16 LN'd activations
            pl.BlockSpec((C, v_tile), lambda v, r: (0, v)),      # weight tile, resident over rows
            pl.BlockSpec((1, v_tile), lambda v, r: (0, v)),
        ],
        out_specs=pl.BlockSpec((r_tile, v_tile), lambda v, r: (r, v)),
        compiler_params=pltpu.CompilerParams(
            dimension_semantics=("parallel", "arbitrary"),
            vmem_limit_bytes=vmem_limit),
    )(xf, kp["lm_w"], kp["lm_b"])


# ---------------------------------------------------------------------------
# Model forward (targets=None path -> loss is None).
# ---------------------------------------------------------------------------
def delight_gpt_forward(idx, kp, *, q_tile=None, r_tile=None, v_tile=None):
    B, T = idx.shape
    x = kp["tok_emb"][idx] + kp["pos_emb"][:T]      # embedding gather (plain JAX glue)
    for blk in kp["blocks"]:
        x = run_block(x, blk, q_tile=q_tile)
    xf = run_lnf(x, kp, r_tile=r_tile)              # (B*T, C) bf16
    logits = run_lm_head(xf, kp, r_tile=r_tile, v_tile=v_tile)
    V = kp["lm_w"].shape[1]
    # TODO(synk): cross-entropy loss path (targets is not None) not implemented in-kernel.
    return logits.reshape(B, T, V), None


# ---------------------------------------------------------------------------
# Parameter init (logical f32 weights, matches module shapes / std=0.02).
# ---------------------------------------------------------------------------
def init_params(key, vocab_size, n_embd, block_size, n_layer, n_head,
                qkv_multipliers=(0.5, 1.0), ffn_multipliers=(0.5, 4.0),
                ffn_intermediate_divisor=256):
    assert n_embd % n_head == 0
    head_size = n_embd // n_head

    att_mults = [round(v, 2) for v in np.linspace(qkv_multipliers[0], qkv_multipliers[1],
                                                  num=n_layer, dtype=float)]
    query_sizes = [int(make_divisible(n_embd * m, divisor=head_size)) for m in att_mults]
    num_qkv_heads = [int(compute_heads(q, head_size)) for q in query_sizes]

    ffn_mults = [round(v, 2) for v in np.linspace(ffn_multipliers[0], ffn_multipliers[1],
                                                  num=n_layer, dtype=float)]
    ffn_sizes = [int(make_divisible(n_embd * m, divisor=ffn_intermediate_divisor))
                 for m in ffn_mults]

    def normal(k, shape):
        return jax.random.normal(k, shape, jnp.float32) * 0.02

    kit = iter(jax.random.split(key, 8 + 8 * n_layer))
    params = {
        "tok_emb": normal(next(kit), (vocab_size, n_embd)),
        "pos_emb": normal(next(kit), (block_size, n_embd)),
        "lnf_g": jnp.ones((1, n_embd), jnp.float32),
        "lnf_b": jnp.zeros((1, n_embd), jnp.float32),
        "lm_w": normal(next(kit), (n_embd, vocab_size)),
        "lm_b": jnp.zeros((1, vocab_size), jnp.float32),
        "blocks": [],
    }
    for l in range(n_layer):
        H = num_qkv_heads[l]
        Dq = H * head_size
        F = ffn_sizes[l]
        params["blocks"].append({
            "num_heads": H, "head_size": head_size,
            "ln1_g": jnp.ones((1, n_embd), jnp.float32),
            "ln1_b": jnp.zeros((1, n_embd), jnp.float32),
            "wq": normal(next(kit), (n_embd, Dq)),
            "wk": normal(next(kit), (n_embd, Dq)),
            "wv": normal(next(kit), (n_embd, Dq)),
            "wp": normal(next(kit), (Dq, n_embd)),
            "bp": jnp.zeros((1, n_embd), jnp.float32),
            "ln2_g": jnp.ones((1, n_embd), jnp.float32),
            "ln2_b": jnp.zeros((1, n_embd), jnp.float32),
            "w1": normal(next(kit), (n_embd, F)),
            "b1": jnp.zeros((1, F), jnp.float32),
            "w2": normal(next(kit), (F, n_embd)),
            "b2": jnp.zeros((1, n_embd), jnp.float32),
        })
    return params


def prepare_kernel_params(params):
    """Kernel-ready layout: fused (C, 3*Dq) QKV with 1/sqrt(hs) folded into the
    q columns; MXU weights stored bf16; LN/bias/embeddings stay f32."""
    kp = {
        "tok_emb": params["tok_emb"], "pos_emb": params["pos_emb"],
        "lnf_g": params["lnf_g"], "lnf_b": params["lnf_b"],
        "lm_w": params["lm_w"].astype(jnp.bfloat16), "lm_b": params["lm_b"],
        "blocks": [],
    }
    for p in params["blocks"]:
        hs = p["head_size"]
        scale = hs ** -0.5
        wqkv = jnp.concatenate([p["wq"] * scale, p["wk"], p["wv"]], axis=1)
        kp["blocks"].append({
            "num_heads": p["num_heads"], "head_size": hs,
            "ln1_g": p["ln1_g"], "ln1_b": p["ln1_b"],
            "wqkv": wqkv.astype(jnp.bfloat16),
            "wp": p["wp"].astype(jnp.bfloat16), "bp": p["bp"],
            "ln2_g": p["ln2_g"], "ln2_b": p["ln2_b"],
            "w1": p["w1"].astype(jnp.bfloat16), "b1": p["b1"],
            "w2": p["w2"].astype(jnp.bfloat16), "b2": p["b2"],
        })
    return kp


# ---------------------------------------------------------------------------
# Pure-JAX f32 reference (module semantics) for the correctness check.
# ---------------------------------------------------------------------------
def ref_forward(idx, params):
    def ln(x, g, b):
        mu = x.mean(-1, keepdims=True)
        var = ((x - mu) ** 2).mean(-1, keepdims=True)
        return (x - mu) / jnp.sqrt(var + 1e-5) * g + b

    B, T = idx.shape
    x = params["tok_emb"][idx] + params["pos_emb"][:T]
    mask = jnp.tril(jnp.ones((T, T), bool))
    for p in params["blocks"]:
        H, hs = p["num_heads"], p["head_size"]
        xn = ln(x, p["ln1_g"], p["ln1_b"])
        q = (xn @ p["wq"]).reshape(B, T, H, hs).transpose(0, 2, 1, 3)
        k = (xn @ p["wk"]).reshape(B, T, H, hs).transpose(0, 2, 1, 3)
        v = (xn @ p["wv"]).reshape(B, T, H, hs).transpose(0, 2, 1, 3)
        s = jnp.einsum("bhtd,bhsd->bhts", q, k) * hs ** -0.5
        s = jnp.where(mask, s, -jnp.inf)
        w = jax.nn.softmax(s, axis=-1)
        o = jnp.einsum("bhts,bhsd->bhtd", w, v).transpose(0, 2, 1, 3).reshape(B, T, H * hs)
        x = x + o @ p["wp"] + p["bp"]
        xn2 = ln(x, p["ln2_g"], p["ln2_b"])
        x = x + jnp.maximum(xn2 @ p["w1"] + p["b1"], 0.0) @ p["w2"] + p["b2"]
    xf = ln(x, params["lnf_g"], params["lnf_b"])
    return xf @ params["lm_w"] + params["lm_b"]


if __name__ == "__main__":
    def check(name, vocab_size, n_embd, block_size, n_layer, n_head, B, **tiles):
        key = jax.random.PRNGKey(0)
        pkey, ikey = jax.random.split(key)
        params = init_params(pkey, vocab_size, n_embd, block_size, n_layer, n_head)
        kparams = prepare_kernel_params(params)
        idx = jax.random.randint(ikey, (B, block_size), 0, vocab_size, dtype=jnp.int32)

        logits, loss = delight_gpt_forward(idx, kparams, **tiles)
        logits = jax.block_until_ready(logits)

        assert logits.shape == (B, block_size, vocab_size)
        assert loss is None
        ref = ref_forward(idx, params)
        max_err = float(jnp.max(jnp.abs(logits - ref)))
        assert jnp.allclose(logits, ref, atol=2e-2, rtol=2e-2), (name, max_err)

    # Single-tile path (original small smoke-test shapes).
    check("small", vocab_size=64, n_embd=32, block_size=8, n_layer=3, n_head=4, B=2)
    # Multi q-tile / multi vocab-tile / multi row-tile paths, exercised at tiny
    # shapes by forcing small tiles (validates the online-softmax k-loop, the
    # K/V scratch carry across q-tiles and the tiled lm_head).
    check("tiled", vocab_size=256, n_embd=32, block_size=16, n_layer=2, n_head=4, B=2,
          q_tile=8, r_tile=8, v_tile=128)

    print("KERNEL_OK")
</pallas_src>

<mosaic_0001>
module attributes {stable_mosaic.version = 11 : i64} {
  func.func @transformer_block_kernel(%arg0: i32, %arg1: i32, %arg2: memref<1x8x32xf32, #tpu.memory_space<vmem>>, %arg3: memref<1x32xf32, #tpu.memory_space<vmem>>, %arg4: memref<1x32xf32, #tpu.memory_space<vmem>>, %arg5: memref<32x48xbf16, #tpu.memory_space<vmem>>, %arg6: memref<16x32xbf16, #tpu.memory_space<vmem>>, %arg7: memref<1x32xf32, #tpu.memory_space<vmem>>, %arg8: memref<1x32xf32, #tpu.memory_space<vmem>>, %arg9: memref<1x32xf32, #tpu.memory_space<vmem>>, %arg10: memref<32x256xbf16, #tpu.memory_space<vmem>>, %arg11: memref<1x256xf32, #tpu.memory_space<vmem>>, %arg12: memref<256x32xbf16, #tpu.memory_space<vmem>>, %arg13: memref<1x32xf32, #tpu.memory_space<vmem>>, %arg14: memref<1x8x32xf32, #tpu.memory_space<vmem>>, %arg15: memref<2x8x8xbf16, #tpu.memory_space<vmem>>, %arg16: memref<2x8x8xbf16, #tpu.memory_space<vmem>>, %arg17: memref<2x8x8xbf16, #tpu.memory_space<vmem>>, %arg18: memref<8x16xbf16, #tpu.memory_space<vmem>>) attributes {dimension_semantics = [#tpu.dimension_semantics<parallel>, #tpu.dimension_semantics<arbitrary>], iteration_bounds = array<i64: 2, 1>, scalar_prefetch = 0 : i64, scratch_operands = 4 : i64, tpu.core_type = #tpu.core_type<tc>, window_params = [{transform_indices = @transform_0, window_bounds = array<i64: 1, 8, 32>}, {pipeline_mode = #tpu.pipeline_mode<synchronous>, transform_indices = @transform_1, window_bounds = array<i64: 1, 32>}, {pipeline_mode = #tpu.pipeline_mode<synchronous>, transform_indices = @transform_2, window_bounds = array<i64: 1, 32>}, {pipeline_mode = #tpu.pipeline_mode<synchronous>, transform_indices = @transform_3, window_bounds = array<i64: 32, 48>}, {pipeline_mode = #tpu.pipeline_mode<synchronous>, transform_indices = @transform_4, window_bounds = array<i64: 16, 32>}, {pipeline_mode = #tpu.pipeline_mode<synchronous>, transform_indices = @transform_5, window_bounds = array<i64: 1, 32>}, {pipeline_mode = #tpu.pipeline_mode<synchronous>, transform_indices = @transform_6, window_bounds = array<i64: 1, 32>}, {pipeline_mode = #tpu.pipeline_mode<synchronous>, transform_indices = @transform_7, window_bounds = array<i64: 1, 32>}, {pipeline_mode = #tpu.pipeline_mode<synchronous>, transform_indices = @transform_8, window_bounds = array<i64: 32, 256>}, {pipeline_mode = #tpu.pipeline_mode<synchronous>, transform_indices = @transform_9, window_bounds = array<i64: 1, 256>}, {pipeline_mode = #tpu.pipeline_mode<synchronous>, transform_indices = @transform_10, window_bounds = array<i64: 256, 32>}, {pipeline_mode = #tpu.pipeline_mode<synchronous>, transform_indices = @transform_11, window_bounds = array<i64: 1, 32>}, {transform_indices = @transform_12, window_bounds = array<i64: 1, 8, 32>}]} {
    %c8_i32 = arith.constant 8 : i32
    %0 = arith.muli %arg1, %c8_i32 : i32
    %1 = tpu.assume_multiple %0, 8 : i32
    %c0 = arith.constant 0 : index
    %c0_0 = arith.constant 0 : index
    %c0_1 = arith.constant 0 : index
    %2 = vector.load %arg2[%c0, %c0_0, %c0_1] : memref<1x8x32xf32, #tpu.memory_space<vmem>>, vector<1x8x32xf32>
    %3 = vector.shape_cast %2 : vector<1x8x32xf32> to vector<8x32xf32>
    %c0_2 = arith.constant 0 : index
    %c0_3 = arith.constant 0 : index
    %4 = vector.load %arg3[%c0_2, %c0_3] : memref<1x32xf32, #tpu.memory_space<vmem>>, vector<1x32xf32>
    %c0_4 = arith.constant 0 : index
    %c0_5 = arith.constant 0 : index
    %5 = vector.load %arg4[%c0_4, %c0_5] : memref<1x32xf32, #tpu.memory_space<vmem>>, vector<1x32xf32>
    %cst = arith.constant dense<0.000000e+00> : vector<8xf32>
    %6 = vector.multi_reduction <add>, %3, %cst [1] : vector<8x32xf32> to vector<8xf32>
    %7 = vector.shape_cast %6 : vector<8xf32> to vector<8x1xf32>
    %cst_6 = arith.constant 3.200000e+01 : f32
    %8 = vector.broadcast %cst_6 : f32 to vector<8x1xf32>
    %9 = arith.divf %7, %8 : vector<8x1xf32>
    %10 = vector.broadcast %9 : vector<8x1xf32> to vector<8x32xf32>
    %11 = arith.subf %3, %10 : vector<8x32xf32>
    %12 = arith.mulf %11, %11 : vector<8x32xf32>
    %cst_7 = arith.constant dense<0.000000e+00> : vector<8xf32>
    %13 = vector.multi_reduction <add>, %12, %cst_7 [1] : vector<8x32xf32> to vector<8xf32>
    %14 = vector.shape_cast %13 : vector<8xf32> to vector<8x1xf32>
    %cst_8 = arith.constant 3.200000e+01 : f32
    %15 = vector.broadcast %cst_8 : f32 to vector<8x1xf32>
    %16 = arith.divf %14, %15 : vector<8x1xf32>
    %17 = vector.broadcast %9 : vector<8x1xf32> to vector<8x32xf32>
    %18 = arith.subf %3, %17 : vector<8x32xf32>
    %cst_9 = arith.constant 9.99999974E-6 : f32
    %19 = vector.broadcast %cst_9 : f32 to vector<8x1xf32>
    %20 = arith.addf %16, %19 : vector<8x1xf32>
    %21 = math.rsqrt %20 : vector<8x1xf32>
    %22 = vector.broadcast %21 : vector<8x1xf32> to vector<8x32xf32>
    %23 = arith.mulf %18, %22 : vector<8x32xf32>
    %24 = vector.broadcast %4 : vector<1x32xf32> to vector<8x32xf32>
    %25 = arith.mulf %23, %24 : vector<8x32xf32>
    %26 = vector.broadcast %5 : vector<1x32xf32> to vector<8x32xf32>
    %27 = arith.addf %25, %26 : vector<8x32xf32>
    %28 = arith.truncf %27 : vector<8x32xf32> to vector<8x32xbf16>
    %c0_10 = arith.constant 0 : index
    %c0_11 = arith.constant 0 : index
    %29 = vector.load %arg5[%c0_10, %c0_11] : memref<32x48xbf16, #tpu.memory_space<vmem>>, vector<32x48xbf16>
    %cst_12 = arith.constant dense<0.000000e+00> : vector<8x48xf32>
    %30 = tpu.matmul %28, %29, %cst_12 {dimension_numbers = #tpu.dot_dimension_numbers<[1], [0], [0], [1], [0, 0, 1, 1], [], []>} : vector<8x32xbf16>, vector<32x48xbf16>, vector<8x48xf32> -> vector<8x48xf32>
    %31 = arith.truncf %30 : vector<8x48xf32> to vector<8x48xbf16>
    %32 = vector.extract_strided_slice %31 {offsets = [0, 0], sizes = [8, 8], strides = [1, 1]} : vector<8x48xbf16> to vector<8x8xbf16>
    %c0_13 = arith.constant 0 : index
    %c0_14 = arith.constant 0 : index
    %c0_15 = arith.constant 0 : index
    %33 = vector.load %arg15[%c0_13, %c0_14, %c0_15] : memref<2x8x8xbf16, #tpu.memory_space<vmem>>, vector<1x8x8xbf16>
    %34 = vector.shape_cast %33 : vector<1x8x8xbf16> to vector<8x8xbf16>
    %35 = vector.shape_cast %32 : vector<8x8xbf16> to vector<1x8x8xbf16>
    tpu.vector_store %arg15[%c0_13, %c0_14, %c0_15], %35 {strides = array<i32>} : memref<2x8x8xbf16, #tpu.memory_space<vmem>>, vector<1x8x8xbf16>,
    %36 = vector.extract_strided_slice %31 {offsets = [0, 16], sizes = [8, 8], strides = [1, 1]} : vector<8x48xbf16> to vector<8x8xbf16>
    %c0_16 = arith.constant 0 : index
    %37 = arith.index_cast %1 : i32 to index
    %c0_17 = arith.constant 0 : index
    %38 = vector.load %arg16[%c0_16, %37, %c0_17] : memref<2x8x8xbf16, #tpu.memory_space<vmem>>, vector<1x8x8xbf16>
    %39 = vector.shape_cast %38 : vector<1x8x8xbf16> to vector<8x8xbf16>
    %40 = vector.shape_cast %36 : vector<8x8xbf16> to vector<1x8x8xbf16>
    tpu.vector_store %arg16[%c0_16, %37, %c0_17], %40 {strides = array<i32>} : memref<2x8x8xbf16, #tpu.memory_space<vmem>>, vector<1x8x8xbf16>,
    %41 = vector.extract_strided_slice %31 {offsets = [0, 32], sizes = [8, 8], strides = [1, 1]} : vector<8x48xbf16> to vector<8x8xbf16>
    %c0_18 = arith.constant 0 : index
    %42 = arith.index_cast %1 : i32 to index
    %c0_19 = arith.constant 0 : index
    %43 = vector.load %arg17[%c0_18, %42, %c0_19] : memref<2x8x8xbf16, #tpu.memory_space<vmem>>, vector<1x8x8xbf16>
    %44 = vector.shape_cast %43 : vector<1x8x8xbf16> to vector<8x8xbf16>
    %45 = vector.shape_cast %41 : vector<8x8xbf16> to vector<1x8x8xbf16>
    tpu.vector_store %arg17[%c0_18, %42, %c0_19], %45 {strides = array<i32>} : memref<2x8x8xbf16, #tpu.memory_space<vmem>>, vector<1x8x8xbf16>,
    %46 = vector.extract_strided_slice %31 {offsets = [0, 8], sizes = [8, 8], strides = [1, 1]} : vector<8x48xbf16> to vector<8x8xbf16>
    %c1 = arith.constant 1 : index
    %c0_20 = arith.constant 0 : index
    %c0_21 = arith.constant 0 : index
    %47 = vector.load %arg15[%c1, %c0_20, %c0_21] : memref<2x8x8xbf16, #tpu.memory_space<vmem>>, vector<1x8x8xbf16>
    %48 = vector.shape_cast %47 : vector<1x8x8xbf16> to vector<8x8xbf16>
    %49 = vector.shape_cast %46 : vector<8x8xbf16> to vector<1x8x8xbf16>
    tpu.vector_store %arg15[%c1, %c0_20, %c0_21], %49 {strides = array<i32>} : memref<2x8x8xbf16, #tpu.memory_space<vmem>>, vector<1x8x8xbf16>,
    %50 = vector.extract_strided_slice %31 {offsets = [0, 24], sizes = [8, 8], strides = [1, 1]} : vector<8x48xbf16> to vector<8x8xbf16>
    %c1_22 = arith.constant 1 : index
    %51 = arith.index_cast %1 : i32 to index
    %c0_23 = arith.constant 0 : index
    %52 = vector.load %arg16[%c1_22, %51, %c0_23] : memref<2x8x8xbf16, #tpu.memory_space<vmem>>, vector<1x8x8xbf16>
    %53 = vector.shape_cast %52 : vector<1x8x8xbf16> to vector<8x8xbf16>
    %54 = vector.shape_cast %50 : vector<8x8xbf16> to vector<1x8x8xbf16>
    tpu.vector_store %arg16[%c1_22, %51, %c0_23], %54 {strides = array<i32>} : memref<2x8x8xbf16, #tpu.memory_space<vmem>>, vector<1x8x8xbf16>,
    %55 = vector.extract_strided_slice %31 {offsets = [0, 40], sizes = [8, 8], strides = [1, 1]} : vector<8x48xbf16> to vector<8x8xbf16>
    %c1_24 = arith.constant 1 : index
    %56 = arith.index_cast %1 : i32 to index
    %c0_25 = arith.constant 0 : index
    %57 = vector.load %arg17[%c1_24, %56, %c0_25] : memref<2x8x8xbf16, #tpu.memory_space<vmem>>, vector<1x8x8xbf16>
    %58 = vector.shape_cast %57 : vector<1x8x8xbf16> to vector<8x8xbf16>
    %59 = vector.shape_cast %55 : vector<8x8xbf16> to vector<1x8x8xbf16>
    tpu.vector_store %arg17[%c1_24, %56, %c0_25], %59 {strides = array<i32>} : memref<2x8x8xbf16, #tpu.memory_space<vmem>>, vector<1x8x8xbf16>,
    %c0_26 = arith.constant 0 : index
    %c0_27 = arith.constant 0 : index
    %c0_28 = arith.constant 0 : index
    %60 = vector.load %arg15[%c0_26, %c0_27, %c0_28] : memref<2x8x8xbf16, #tpu.memory_space<vmem>>, vector<2x8x8xbf16>
    %61 = tpu.iota {dimensions = array<i32: 0>} : vector<8x8xi32>
    %62 = vector.broadcast %1 : i32 to vector<8x8xi32>
    %63 = arith.addi %62, %61 : vector<8x8xi32>
    %cst_29 = arith.constant -1.000000e+30 : f32
    %64 = vector.broadcast %cst_29 : f32 to vector<2x8x1xf32>
    %cst_30 = arith.constant 0.000000e+00 : f32
    %65 = vector.broadcast %cst_30 : f32 to vector<2x8x1xf32>
    %cst_31 = arith.constant 0.000000e+00 : f32
    %66 = vector.broadcast %cst_31 : f32 to vector<2x8x8xf32>
    %c1_i32 = arith.constant 1 : i32
    %67 = arith.addi %arg1, %c1_i32 : i32
    %c0_i32 = arith.constant 0 : i32
    %68 = arith.subi %67, %c0_i32 : i32
    %69 = arith.addi %c0_i32, %68 : i32
    %c1_i32_32 = arith.constant 1 : i32
    %70:3 = scf.for %arg19 = %c0_i32 to %69 step %c1_i32_32 iter_args(%arg20 = %64, %arg21 = %65, %arg22 = %66) -> (vector<2x8x1xf32>, vector<2x8x1xf32>, vector<2x8x8xf32>)  : i32 {
      %c8_i32_66 = arith.constant 8 : i32
      %131 = arith.muli %arg19, %c8_i32_66 : i32
      %132 = tpu.assume_multiple %131, 8 : i32
      %c0_67 = arith.constant 0 : index
      %133 = arith.index_cast %132 : i32 to index
      %c0_68 = arith.constant 0 : index
      %134 = vector.load %arg16[%c0_67, %133, %c0_68] : memref<2x8x8xbf16, #tpu.memory_space<vmem>>, vector<2x8x8xbf16>
      %c0_69 = arith.constant 0 : index
      %135 = arith.index_cast %132 : i32 to index
      %c0_70 = arith.constant 0 : index
      %136 = vector.load %arg17[%c0_69, %135, %c0_70] : memref<2x8x8xbf16, #tpu.memory_space<vmem>>, vector<2x8x8xbf16>
      "tpu.trace_start"() <{level = 10 : i32, message = "hqd,hkd->hqk"}> : () -> ()
      %cst_71 = arith.constant dense<0.000000e+00> : vector<2x8x8xf32>
      %137 = tpu.matmul %60, %134, %cst_71 {dimension_numbers = #tpu.dot_dimension_numbers<[2], [2], [1], [1], [0, 0, 0, 1, 1, 1], [0], [0]>} : vector<2x8x8xbf16>, vector<2x8x8xbf16>, vector<2x8x8xf32> -> vector<2x8x8xf32>
      "tpu.trace_stop"() : () -> ()
      %138 = tpu.iota {dimensions = array<i32: 1>} : vector<8x8xi32>
      %139 = vector.broadcast %132 : i32 to vector<8x8xi32>
      %140 = arith.addi %139, %138 : vector<8x8xi32>
      %141 = arith.cmpi sge, %63, %140 : vector<8x8xi32>
      %142 = vector.shape_cast %141 : vector<8x8xi1> to vector<1x8x8xi1>
      %cst_72 = arith.constant -1.000000e+30 : f32
      %143 = vector.shape_cast %142 : vector<1x8x8xi1> to vector<1x8x8xi1>
      %144 = vector.broadcast %143 : vector<1x8x8xi1> to vector<2x8x8xi1>
      %145 = vector.broadcast %cst_72 : f32 to vector<2x8x8xf32>
      %146 = arith.select %144, %137, %145 : vector<2x8x8xi1>, vector<2x8x8xf32>
      %cst_73 = arith.constant dense<0xFF800000> : vector<2x8xf32>
      %147 = vector.multi_reduction <maximumf>, %146, %cst_73 [2] : vector<2x8x8xf32> to vector<2x8xf32>
      %148 = vector.shape_cast %147 : vector<2x8xf32> to vector<2x8x1xf32>
      %149 = arith.maximumf %arg20, %148 : vector<2x8x1xf32>
      %150 = arith.subf %arg20, %149 : vector<2x8x1xf32>
      %151 = math.exp %150 : vector<2x8x1xf32>
      %152 = vector.broadcast %149 : vector<2x8x1xf32> to vector<2x8x8xf32>
      %153 = arith.subf %146, %152 : vector<2x8x8xf32>
      %154 = math.exp %153 : vector<2x8x8xf32>
      %155 = arith.mulf %151, %arg21 : vector<2x8x1xf32>
      %cst_74 = arith.constant dense<0.000000e+00> : vector<2x8xf32>
      %156 = vector.multi_reduction <add>, %154, %cst_74 [2] : vector<2x8x8xf32> to vector<2x8xf32>
      %157 = vector.shape_cast %156 : vector<2x8xf32> to vector<2x8x1xf32>
      %158 = arith.addf %155, %157 : vector<2x8x1xf32>
      %159 = vector.broadcast %151 : vector<2x8x1xf32> to vector<2x8x8xf32>
      %160 = arith.mulf %159, %arg22 : vector<2x8x8xf32>
      %161 = arith.truncf %154 : vector<2x8x8xf32> to vector<2x8x8xbf16>
      "tpu.trace_start"() <{level = 10 : i32, message = "hqk,hkd->hqd"}> : () -> ()
      %cst_75 = arith.constant dense<0.000000e+00> : vector<2x8x8xf32>
      %162 = tpu.matmul %161, %136, %cst_75 {dimension_numbers = #tpu.dot_dimension_numbers<[2], [1], [1], [2], [0, 0, 0, 1, 1, 2], [0], [0]>} : vector<2x8x8xbf16>, vector<2x8x8xbf16>, vector<2x8x8xf32> -> vector<2x8x8xf32>
      "tpu.trace_stop"() : () -> ()
      %163 = arith.addf %160, %162 : vector<2x8x8xf32>
      scf.yield %149, %158, %163 : vector<2x8x1xf32>, vector<2x8x1xf32>, vector<2x8x8xf32>
    }
    %71 = tpu.reciprocal %70#1 {approx = true} : vector<2x8x1xf32> -> vector<2x8x1xf32>
    %72 = vector.broadcast %71 : vector<2x8x1xf32> to vector<2x8x8xf32>
    %73 = arith.mulf %70#2, %72 : vector<2x8x8xf32>
    %74 = vector.extract_strided_slice %73 {offsets = [0, 0, 0], sizes = [1, 8, 8], strides = [1, 1, 1]} : vector<2x8x8xf32> to vector<1x8x8xf32>
    %75 = vector.shape_cast %74 : vector<1x8x8xf32> to vector<8x8xf32>
    %76 = arith.truncf %75 : vector<8x8xf32> to vector<8x8xbf16>
    %c0_33 = arith.constant 0 : index
    %c0_34 = arith.constant 0 : index
    %77 = vector.load %arg18[%c0_33, %c0_34] : memref<8x16xbf16, #tpu.memory_space<vmem>>, vector<8x8xbf16>
    tpu.vector_store %arg18[%c0_33, %c0_34], %76 {strides = array<i32>} : memref<8x16xbf16, #tpu.memory_space<vmem>>, vector<8x8xbf16>,
    %78 = vector.extract_strided_slice %73 {offsets = [1, 0, 0], sizes = [1, 8, 8], strides = [1, 1, 1]} : vector<2x8x8xf32> to vector<1x8x8xf32>
    %79 = vector.shape_cast %78 : vector<1x8x8xf32> to vector<8x8xf32>
    %80 = arith.truncf %79 : vector<8x8xf32> to vector<8x8xbf16>
    %c0_35 = arith.constant 0 : index
    %c8 = arith.constant 8 : index
    %81 = vector.load %arg18[%c0_35, %c8] : memref<8x16xbf16, #tpu.memory_space<vmem>>, vector<8x8xbf16>
    tpu.vector_store %arg18[%c0_35, %c8], %80 {strides = array<i32>} : memref<8x16xbf16, #tpu.memory_space<vmem>>, vector<8x8xbf16>,
    %c0_36 = arith.constant 0 : index
    %c0_37 = arith.constant 0 : index
    %82 = vector.load %arg18[%c0_36, %c0_37] : memref<8x16xbf16, #tpu.memory_space<vmem>>, vector<8x16xbf16>
    %c0_38 = arith.constant 0 : index
    %c0_39 = arith.constant 0 : index
    %83 = vector.load %arg6[%c0_38, %c0_39] : memref<16x32xbf16, #tpu.memory_space<vmem>>, vector<16x32xbf16>
    %cst_40 = arith.constant dense<0.000000e+00> : vector<8x32xf32>
    %84 = tpu.matmul %82, %83, %cst_40 {dimension_numbers = #tpu.dot_dimension_numbers<[1], [0], [0], [1], [0, 0, 1, 1], [], []>} : vector<8x16xbf16>, vector<16x32xbf16>, vector<8x32xf32> -> vector<8x32xf32>
    %c0_41 = arith.constant 0 : index
    %c0_42 = arith.constant 0 : index
    %85 = vector.load %arg7[%c0_41, %c0_42] : memref<1x32xf32, #tpu.memory_space<vmem>>, vector<1x32xf32>
    %86 = vector.broadcast %85 : vector<1x32xf32> to vector<8x32xf32>
    %87 = arith.addf %84, %86 : vector<8x32xf32>
    %88 = arith.addf %3, %87 : vector<8x32xf32>
    %c0_43 = arith.constant 0 : index
    %c0_44 = arith.constant 0 : index
    %89 = vector.load %arg8[%c0_43, %c0_44] : memref<1x32xf32, #tpu.memory_space<vmem>>, vector<1x32xf32>
    %c0_45 = arith.constant 0 : index
    %c0_46 = arith.constant 0 : index
    %90 = vector.load %arg9[%c0_45, %c0_46] : memref<1x32xf32, #tpu.memory_space<vmem>>, vector<1x32xf32>
    %cst_47 = arith.constant dense<0.000000e+00> : vector<8xf32>
    %91 = vector.multi_reduction <add>, %88, %cst_47 [1] : vector<8x32xf32> to vector<8xf32>
    %92 = vector.shape_cast %91 : vector<8xf32> to vector<8x1xf32>
    %cst_48 = arith.constant 3.200000e+01 : f32
    %93 = vector.broadcast %cst_48 : f32 to vector<8x1xf32>
    %94 = arith.divf %92, %93 : vector<8x1xf32>
    %95 = vector.broadcast %94 : vector<8x1xf32> to vector<8x32xf32>
    %96 = arith.subf %88, %95 : vector<8x32xf32>
    %97 = arith.mulf %96, %96 : vector<8x32xf32>
    %cst_49 = arith.constant dense<0.000000e+00> : vector<8xf32>
    %98 = vector.multi_reduction <add>, %97, %cst_49 [1] : vector<8x32xf32> to vector<8xf32>
    %99 = vector.shape_cast %98 : vector<8xf32> to vector<8x1xf32>
    %cst_50 = arith.constant 3.200000e+01 : f32
    %100 = vector.broadcast %cst_50 : f32 to vector<8x1xf32>
    %101 = arith.divf %99, %100 : vector<8x1xf32>
    %102 = vector.broadcast %94 : vector<8x1xf32> to vector<8x32xf32>
    %103 = arith.subf %88, %102 : vector<8x32xf32>
    %cst_51 = arith.constant 9.99999974E-6 : f32
    %104 = vector.broadcast %cst_51 : f32 to vector<8x1xf32>
    %105 = arith.addf %101, %104 : vector<8x1xf32>
    %106 = math.rsqrt %105 : vector<8x1xf32>
    %107 = vector.broadcast %106 : vector<8x1xf32> to vector<8x32xf32>
    %108 = arith.mulf %103, %107 : vector<8x32xf32>
    %109 = vector.broadcast %89 : vector<1x32xf32> to vector<8x32xf32>
    %110 = arith.mulf %108, %109 : vector<8x32xf32>
    %111 = vector.broadcast %90 : vector<1x32xf32> to vector<8x32xf32>
    %112 = arith.addf %110, %111 : vector<8x32xf32>
    %113 = arith.truncf %112 : vector<8x32xf32> to vector<8x32xbf16>
    %c0_52 = arith.constant 0 : index
    %c0_53 = arith.constant 0 : index
    %114 = vector.load %arg10[%c0_52, %c0_53] : memref<32x256xbf16, #tpu.memory_space<vmem>>, vector<32x256xbf16>
    %cst_54 = arith.constant dense<0.000000e+00> : vector<8x256xf32>
    %115 = tpu.matmul %113, %114, %cst_54 {dimension_numbers = #tpu.dot_dimension_numbers<[1], [0], [0], [1], [0, 0, 1, 1], [], []>} : vector<8x32xbf16>, vector<32x256xbf16>, vector<8x256xf32> -> vector<8x256xf32>
    %c0_55 = arith.constant 0 : index
    %c0_56 = arith.constant 0 : index
    %116 = vector.load %arg11[%c0_55, %c0_56] : memref<1x256xf32, #tpu.memory_space<vmem>>, vector<1x256xf32>
    %117 = vector.broadcast %116 : vector<1x256xf32> to vector<8x256xf32>
    %118 = arith.addf %115, %117 : vector<8x256xf32>
    %cst_57 = arith.constant 0.000000e+00 : f32
    %119 = vector.broadcast %cst_57 : f32 to vector<8x256xf32>
    %120 = arith.maximumf %118, %119 : vector<8x256xf32>
    %121 = arith.truncf %120 : vector<8x256xf32> to vector<8x256xbf16>
    %c0_58 = arith.constant 0 : index
    %c0_59 = arith.constant 0 : index
    %122 = vector.load %arg12[%c0_58, %c0_59] : memref<256x32xbf16, #tpu.memory_space<vmem>>, vector<256x32xbf16>
    %cst_60 = arith.constant dense<0.000000e+00> : vector<8x32xf32>
    %123 = tpu.matmul %121, %122, %cst_60 {dimension_numbers = #tpu.dot_dimension_numbers<[1], [0], [0], [1], [0, 0, 1, 1], [], []>} : vector<8x256xbf16>, vector<256x32xbf16>, vector<8x32xf32> -> vector<8x32xf32>
    %c0_61 = arith.constant 0 : index
    %c0_62 = arith.constant 0 : index
    %124 = vector.load %arg13[%c0_61, %c0_62] : memref<1x32xf32, #tpu.memory_space<vmem>>, vector<1x32xf32>
    %125 = vector.broadcast %124 : vector<1x32xf32> to vector<8x32xf32>
    %126 = arith.addf %123, %125 : vector<8x32xf32>
    %127 = arith.addf %88, %126 : vector<8x32xf32>
    %c0_63 = arith.constant 0 : index
    %c0_64 = arith.constant 0 : index
    %c0_65 = arith.constant 0 : index
    %128 = vector.load %arg14[%c0_63, %c0_64, %c0_65] : memref<1x8x32xf32, #tpu.memory_space<vmem>>, vector<1x8x32xf32>
    %129 = vector.shape_cast %128 : vector<1x8x32xf32> to vector<8x32xf32>
    %130 = vector.shape_cast %127 : vector<8x32xf32> to vector<1x8x32xf32>
    tpu.vector_store %arg14[%c0_63, %c0_64, %c0_65], %130 {strides = array<i32>} : memref<1x8x32xf32, #tpu.memory_space<vmem>>, vector<1x8x32xf32>,
    return
  }
  func.func @transform_0(%arg0: i32, %arg1: i32) -> (i32, i32, i32) {
    %c0_i32 = arith.constant 0 : i32
    %c0_i32_0 = arith.constant 0 : i32
    return %arg0, %arg1, %c0_i32 : i32, i32, i32
  }
  func.func @transform_1(%arg0: i32, %arg1: i32) -> (i32, i32) {
    %c0_i32 = arith.constant 0 : i32
    %c0_i32_0 = arith.constant 0 : i32
    %c0_i32_1 = arith.constant 0 : i32
    return %c0_i32, %c0_i32_0 : i32, i32
  }
  func.func @transform_2(%arg0: i32, %arg1: i32) -> (i32, i32) {
    %c0_i32 = arith.constant 0 : i32
    %c0_i32_0 = arith.constant 0 : i32
    %c0_i32_1 = arith.constant 0 : i32
    return %c0_i32, %c0_i32_0 : i32, i32
  }
  func.func @transform_3(%arg0: i32, %arg1: i32) -> (i32, i32) {
    %c0_i32 = arith.constant 0 : i32
    %c0_i32_0 = arith.constant 0 : i32
    %c0_i32_1 = arith.constant 0 : i32
    return %c0_i32, %c0_i32_0 : i32, i32
  }
  func.func @transform_4(%arg0: i32, %arg1: i32) -> (i32, i32) {
    %c0_i32 = arith.constant 0 : i32
    %c0_i32_0 = arith.constant 0 : i32
    %c0_i32_1 = arith.constant 0 : i32
    return %c0_i32, %c0_i32_0 : i32, i32
  }
  func.func @transform_5(%arg0: i32, %arg1: i32) -> (i32, i32) {
    %c0_i32 = arith.constant 0 : i32
    %c0_i32_0 = arith.constant 0 : i32
    %c0_i32_1 = arith.constant 0 : i32
    return %c0_i32, %c0_i32_0 : i32, i32
  }
  func.func @transform_6(%arg0: i32, %arg1: i32) -> (i32, i32) {
    %c0_i32 = arith.constant 0 : i32
    %c0_i32_0 = arith.constant 0 : i32
    %c0_i32_1 = arith.constant 0 : i32
    return %c0_i32, %c0_i32_0 : i32, i32
  }
  func.func @transform_7(%arg0: i32, %arg1: i32) -> (i32, i32) {
    %c0_i32 = arith.constant 0 : i32
    %c0_i32_0 = arith.constant 0 : i32
    %c0_i32_1 = arith.constant 0 : i32
    return %c0_i32, %c0_i32_0 : i32, i32
  }
  func.func @transform_8(%arg0: i32, %arg1: i32) -> (i32, i32) {
    %c0_i32 = arith.constant 0 : i32
    %c0_i32_0 = arith.constant 0 : i32
    %c0_i32_1 = arith.constant 0 : i32
    return %c0_i32, %c0_i32_0 : i32, i32
  }
  func.func @transform_9(%arg0: i32, %arg1: i32) -> (i32, i32) {
    %c0_i32 = arith.constant 0 : i32
    %c0_i32_0 = arith.constant 0 : i32
    %c0_i32_1 = arith.constant 0 : i32
    return %c0_i32, %c0_i32_0 : i32, i32
  }
  func.func @transform_10(%arg0: i32, %arg1: i32) -> (i32, i32) {
    %c0_i32 = arith.constant 0 : i32
    %c0_i32_0 = arith.constant 0 : i32
    %c0_i32_1 = arith.constant 0 : i32
    return %c0_i32, %c0_i32_0 : i32, i32
  }
  func.func @transform_11(%arg0: i32, %arg1: i32) -> (i32, i32) {
    %c0_i32 = arith.constant 0 : i32
    %c0_i32_0 = arith.constant 0 : i32
    %c0_i32_1 = arith.constant 0 : i32
    return %c0_i32, %c0_i32_0 : i32, i32
  }
  func.func @transform_12(%arg0: i32, %arg1: i32) -> (i32, i32, i32) {
    %c0_i32 = arith.constant 0 : i32
    %c0_i32_0 = arith.constant 0 : i32
    return %arg0, %arg1, %c0_i32 : i32, i32, i32
  }
}

</mosaic_0001>

<bundles_post_ra>
// kernel: tpu_custom_call.1
= control target key start
LH: loop header
LB: loop body
LE: loop exit
PB: predicated region body
PF: predicated region fallthrough
CT: control target
= control target key end

     0   :  { %s2159_s0 = inlined_call_operand.vmem [shape: f32[2,8,32], index: 0, kind: input, shape index: {}]   ;;  %s2160_s1 = inlined_call_operand.vmem [shape: f32[1,32], index: 1, kind: input, shape index: {}]   ;;  %s2161_s2 = inlined_call_operand.vmem [shape: f32[1,32], index: 2, kind: input, shape index: {}]   ;;  %s2162_s3 = inlined_call_operand.vmem [shape: bf16[32,48], index: 3, kind: input, shape index: {}]   ;;  %s2163_s4 = inlined_call_operand.vmem [shape: bf16[16,32], index: 4, kind: input, shape index: {}]   ;;  %s2164_s5 = inlined_call_operand.vmem [shape: f32[1,32], index: 5, kind: input, shape index: {}]   ;;  %s2165_s6 = inlined_call_operand.vmem [shape: f32[1,32], index: 6, kind: input, shape index: {}]   ;;  %s2166_s7 = inlined_call_operand.vmem [shape: f32[1,32], index: 7, kind: input, shape index: {}]   ;;  %s2167_s8 = inlined_call_operand.vmem [shape: bf16[32,256], index: 8, kind: input, shape index: {}]   ;;  %s2168_s9 = inlined_call_operand.vmem [shape: f32[1,256], index: 9, kind: input, shape index: {}]   ;;  %s2169_s10 = inlined_call_operand.vmem [shape: bf16[256,32], index: 10, kind: input, shape index: {}]   ;;  %s2170_s11 = inlined_call_operand.vmem [shape: f32[1,32], index: 11, kind: input, shape index: {}]   ;;  %s2171_s12 = inlined_call_operand.hbm [shape: f32[2,8,32], index: 12, kind: output, shape index: {}]  }
   0x1   :  { %2173 = sst [smem:[#allocation9_spill]] %s2159_s0 }
   0x2   :  { %2174 = sst [smem:[#allocation10_spill]] %s2160_s1 }
   0x3   :  { %2175 = sst [smem:[#allocation11_spill]] %s2161_s2 }
   0x4   :  { %17 = vsyncpa [#allocation7], 0 }
   0x5   :  { %19 = vsyncpa [#allocation7 + $0x1], 0  ;;  %s1822_s21 = smov 0   ;;  %s1824_s22 = smov 0  }
   0x6   :  { %s1826_s23 = smov 0   ;;  %s1828_s24 = smov 0  }
   0x7   :  { %s1830_s25 = smov 0   ;;  %s1832_s26 = smov 0  }
   0x8 LB: > { %s1317_s27 = sadd.s32 4294967295, %s1715_s26   ;;  %s1318_s28 = sadd.s32 4294967294, %s1715_s26   ;;  %s1715_s26 = sphi %s1832_s26, %s25_s26   ;;  %s1711_s25 = sphi %s1830_s25, %s2194_s25   ;;  %s1707_s24 = sphi %s1828_s24, %s2193_s24   ;;  %s1703_s23 = sphi %s1826_s23, %s2192_s23   ;;  %s1699_s22 = sphi %s1824_s22, %s2191_s22   ;;  %s1695_s21 = sphi %s1822_s21, %s2190_s21  }
   0x9   : > { %s37_s29 = sadd.s32 1, %s1711_s25  ;;  %s305_s30 = sadd.s32 1, %s1703_s23 }
   0xa   : > { %p39_p0 = scmp.ge.s32.totalorder %s37_s29, 2  ;;  %p315_p1 = scmp.ne.s32.totalorder %s1703_s23, %s1699_s22 }
   0xb   : > { %p316_p2 = scmp.eq.s32.totalorder %s1317_s27, 1  ;;  %p321_p3 = scmp.ne.s32.totalorder %s1699_s22, %s1695_s21 }
   0xc   : > { %s2196_s29 = smov (%p39_p0, %s37_s29), 0  ;;  %p322_p5 = scmp.eq.s32.totalorder %s1318_s28, 1 }
   0xd   : > { %p1862_p4 = por %p316_p2, %p315_p1  ;;  %s300_s14 = ssub.s32 %s1711_s25, %s2196_s29 }
   0xe   : > { %p1321_p6 = scmp.ge.s32.totalorder %s1715_s26, 1  ;;  %p303_p7 = scmp.eq.s32.totalorder %s300_s14, 0 }
   0xf   : > { %p1869_p8 = por %p322_p5, %p321_p3  ;;  %p383_p9 = scmp.lt.s32.totalorder %s1715_s26, 3 }
  0x10   : > { %s1875_s16 = scalar_select %p303_p7, %s1703_s23, %s305_s30  }
  0x11   : > { %p384_p10 = pnand %p1321_p6, %p383_p9 }
  0x12   : > { %p427_p11 = scmp.lt.s32.totalorder (!%p384_p10), %s1707_s24, 1  ;;  %vm439_vm0 = vcmask (!%p384_p10), 261120   ;;  %s2178_s0 = sld [smem:[#allocation9_spill]] (!%p384_p10)  ;;  %v1568_v7 = vld [vmem:[%s2162_s3] sm:$0xff] (!%p384_p10)   ;;  %v1745_v8 = vmov (!%p384_p10), 0.0   ;;  %vm1746_vm1 = vmmov (!%p384_p10), 0   ;;  %v568_v21 = vlaneseq (!%p384_p10) }
  0x13   : > { %387 = sbr.rel (%p384_p10) target bundleno = 2405 (0x965), region = 68  ;;  %s2172_s28 = sand.u32 (!%p384_p10), 1, %s1699_s22   ;;  %1408 = vmatprep.subr.bf16.mxu0 (!%p384_p10), %v1745_v8  ;;  %1412 = vmatprep.mubr.msk.bf16.mxu0 (!%p384_p10), %vm1746_vm1, %v1745_v8  ;;  %v1569_v9 = vld [vmem:[%s2162_s3 + $0x8] sm:$0xff] (!%p384_p10)   ;;  %vm529_vm2 = vcmask (!%p384_p10), 60416   ;;  %v1924_v34 = vmov (!%p384_p10), 0.0   ;;  %v1926_v35 = vmov (!%p384_p10), 0.0  }
  0x14   : > { %1409 = vmatpush3.bf16.msra.mxu0 (!%p384_p10), %v1568_v7  ;;  %s2179_s1 = sld [smem:[#allocation10_spill]] (!%p384_p10)  ;;  %s2180_s2 = sld [smem:[#allocation11_spill]] (!%p384_p10)  ;;  %v1911_v25 = vshrl.u32 (!%p384_p10), %v568_v21, 7  ;;  %v1928_v36 = vmov (!%p384_p10), 0.0   ;;  %v1930_v37 = vmov (!%p384_p10), 0.0  }
  0x15   : > { %1410 = vmatprep.subr.bf16.mxu0 (!%p384_p10), %v1745_v8  ;;  %s1748_s19 = smov (!%p384_p10), 120   ;;  %s1749_s20 = smov (!%p384_p10), 112   ;;  %v1932_v38 = vmov (!%p384_p10), -1e+30   ;;  %v1934_v39 = vmov (!%p384_p10), -1e+30  }
  0x16   : > { %s1751_s30 = smov (!%p384_p10), 88  }
  0x18   : > { %1411 = vmatpush3.bf16.msra.mxu0 (!%p384_p10), %v1569_v9 }
  0x1a   : > { %s428_s17 = scalar_select %p427_p11, %s1707_s24, 1  ;;  %v1324_v14 = vld [vmem:[%s2179_s1] ss:$0 sm:$0xff] }
  0x1b   : > { %v1325_v16 = vld [vmem:[%s2180_s2] ss:$0 sm:$0xff] }
  0x1c   : > { %s1323_s18 = sshll.u32 %s428_s17, 3  ;;  %s1894_s17 = sshll.u32 %s2172_s28, 3 }
  0x1d   : > { %s433_s27 = scalar_lea.vmem %s2178_s0, %s1323_s18  ;;  %s1747_s18 = smov 96  }
  0x1e   : > { %v1882_v0 = vld [vmem:[%s433_s27] sm:$0xff]  ;;  %s1750_s27 = smov 104  }
  0x1f   : > { %v440_v1 = vsel %vm439_vm0, %v1882_v0, 0.0 }
  0x20   : > { %441 = vadd.xlane.f32.xlu0 %v440_v1 }
  0xad   : > { %v442_v2 = vpop.xlane.xlu0 %441 }
  0xae   : > { %v444_v3 = vmul.f32 0.03125, %v442_v2 }
  0xb0   : > { %v445_v4 = vsub.f32 %v1882_v0, %v444_v3 }
  0xb2   : > { %v446_v5 = vmul.f32 %v445_v4, %v445_v4 }
  0xb4   : > { %v447_v6 = vsel %vm439_vm0, %v446_v5, 0.0 }
  0xb5   : > { %448 = vadd.xlane.f32.xlu0 %v447_v6 }
 0x142   : > { %v449_v10 = vpop.xlane.xlu0 %448 }
 0x143   : > { %v450_v11 = vmul.f32 0.03125, %v449_v10 }
 0x145   : > { %v451_v12 = vadd.f32 1e-05, %v450_v11 }
 0x147   : > { %1570 = vrsqrt.f32 %v451_v12 }
 0x151   : > { %v1571_v13 = vpop.eup %1570 }
 0x152   : > { %v453_v15 = vmul.f32 %v1571_v13, %v445_v4 }
 0x154   : > { %v460_v17 = vmul.f32 %v1324_v14, %v453_v15 }
 0x156   : > { %v467_v18 = vadd.f32 %v1325_v16, %v460_v17 }
 0x158   : > { %v468_v19 = vpack.c.bf16 %v467_v18, %v467_v18 }
 0x15a   : > { %1413 = vmatmul.mubr.msk.bf16.vlgmr.msra.gmra.mrb[0].mxu0 %vm439_vm0, %v468_v19 }
 0x22d   : > { %v522_v20 = vpop.f32.mrb[0].mxu0 }
 0x22e   : > { %v528_v22 = vpack.c.bf16 %v522_v20, %v522_v20  ;;  %v1414_v23 = vpop.f32.mrb[1].mxu0 }
 0x22f   : > { %v525_v24 = vpop.f32.mrb[2].mxu0 }
 0x230   : > { %542 = vrot.lane.b32.xlu0 %v528_v22, %s1747_s18  ;;  %548 = vrot.lane.b32.xlu1 %v528_v22, %s1748_s19  ;;  %v1415_v26 = vpop.f32.mrb[3].mxu0  ;;  %530 = vst.msk [vmem:[#allocation2] sm:$0xf] %vm529_vm2, %v528_v22  ;;  %s1936_s18 = smov 0  }
 0x234   : > { %534 = vrot.lane.b32.xlu1 %v528_v22, %s1749_s20 }
 0x237   : > { %v1914_v27 = vld [vmem:[#allocation2] sm:$0xf] }
 0x238   : > { %553 = vrot.lane.b32.xlu1 %v528_v22, %s1750_s27 }
 0x23c   : > { %560 = vrot.lane.b32.xlu1 %v528_v22, %s1751_s30 }
 0x2a2   : > { %v543_v28 = vpop.permute.xlu0 %542  ;;  %v549_v29 = vpop.permute.xlu1 %548 }
 0x2a3   : > { %547 = vst.msk [vmem:[#allocation4] sm:$0xf] %vm529_vm2, %v543_v28  ;;  %552 = vst.msk [vmem:[#allocation2 + $0x4] sm:$0xf] %vm529_vm2, %v549_v29 }
 0x2a6   : > { %v535_v30 = vpop.permute.xlu1 %534 }
 0x2a7   : > { %541 = vst.msk [vmem:[#allocation3] sm:$0xf] %vm529_vm2, %v535_v30 }
 0x2aa   : > { %v1919_v31 = vld [vmem:[#allocation2 + $0x4] sm:$0xf]  ;;  %v554_v32 = vpop.permute.xlu1 %553 }
 0x2ab   : > { %1330 = vst.msk [vmem:[#allocation3 + $0x4] sm:$0xf] %vm529_vm2, %v554_v32 }
 0x2ae   : > { %v561_v33 = vpop.permute.xlu1 %560 }
 0x2af   : > { %1331 = vst.msk [vmem:[#allocation4 + $0x4] sm:$0xf] %vm529_vm2, %v561_v33 }
 0x2b0 LB: >> { %v1752_v40 = vmov 0.0   ;;  %s1332_s19 = sshll.u32 %s1743_s18, 3  ;;  %vm1753_vm3 = vmmov 0   ;;  %vm596_vm4 = vcmask 64512   ;;  %v690_v45 = vand.u32 127, %v568_v21  ;;  %s576_s18 = sadd.s32 1, %s1743_s18   ;;  %s1743_s18 = sphi %s1936_s18, %s576_s18   ;;  %v1739_v39 = vphi %v1934_v39, %v2186_v39   ;;  %v1735_v38 = vphi %v1932_v38, %v2185_v38   ;;  %v1731_v37 = vphi %v1930_v37, %v2184_v37   ;;  %v1727_v36 = vphi %v1928_v36, %v2183_v36   ;;  %v1723_v35 = vphi %v1926_v35, %v2182_v35   ;;  %v1719_v34 = vphi %v1924_v34, %v2181_v34  }
 0x2b1   : >> { %1416 = vmatprep.subr.bf16.mxu0 %v1752_v40  ;;  %1422 = vmatprep.subr.bf16.mxu1 %v1752_v40  ;;  %s1962_s20 = sshra.s32 %s1332_s19, 3  ;;  %v691_v46 = vstv %s1332_s19  ;;  %vm735_vm6 = vcmask 1043456   ;;  %p575_p12 = scmp.ge.s32.totalorder %s576_s18, 1 }
 0x2b2   : >> { %1418 = vmatprep.mubr.msk.bf16.mxu0 %vm1753_vm3, %v1752_v40  ;;  %1424 = vmatprep.mubr.msk.bf16.mxu1 %vm1753_vm3, %v1752_v40  ;;  %s1333_s27 = sshll.u32 %s1962_s20, 2  ;;  %v692_v47 = vadd.s32 %v691_v46, %v690_v45  ;;  %s1754_s18 = smov (%p575_p12), 8   ;;  %vm840_vm7 = vcmask (%p575_p12), 126016   ;;  %vm858_vm8 = vcmask (%p575_p12), 130048  }
 0x2b3   : >> { %s589_s30 = scalar_lea.vmem [#allocation3], %s1333_s27  ;;  %s593_s19 = scalar_lea.vmem [#allocation4], %s1333_s27 }
 0x2b4   : >> { %v590_v41 = vld [vmem:[%s589_s30] sm:$0xf]  ;;  %v591_v42 = vld [vmem:[%s589_s30 + $0x4] sm:$0xf]  ;;  %vm693_vm5 = vcmp.ge.s32.totalorder %v1911_v25, %v692_v47  ;;  %s1368_s20 = sshll.u32 (%p575_p12), %s1707_s24, 7  ;;  %s2187_s27 = scalar_lea.vmem (%p575_p12), [#allocation6], %s1894_s17 }
 0x2b5   : >> { %v601_v43 = vsel %vm596_vm4, %v590_v41, 0  ;;  %v647_v44 = vsel %vm596_vm4, %v591_v42, 0  ;;  %v1580_v47 = vld [vmem:[%s2163_s4] sm:$0xff] (%p575_p12)   ;;  %s2107_s28 = scalar_lea.hbm (%p575_p12), %s2171_s12, %s1368_s20  ;;  %s2188_s0 = smov (%p575_p12), %s2187_s27 }
 0x2b6   : >> { %1417 = vmatpush3.bf16.xpose.msra.mxu0 %v601_v43  ;;  %1423 = vmatpush3.bf16.xpose.msra.mxu1 %v647_v44  ;;  %v594_v60 = vld [vmem:[%s593_s19] sm:$0xf]  ;;  %v595_v61 = vld [vmem:[%s593_s19 + $0x4] sm:$0xf]  ;;  %s2189_s14 = sand.u32 (%p575_p12), 1, %s1699_s22   ;;  %s1756_s19 = smov (%p575_p12), [#allocation6]  }
 0x2b7   : >> { %1428 = vmatprep.subr.bf16.mxu0 %v1752_v40  ;;  %1434 = vmatprep.subr.bf16.mxu1 %v1752_v40  ;;  %v737_v62 = vsel %vm735_vm6, %v594_v60, 0  ;;  %v783_v63 = vsel %vm735_vm6, %v595_v61, 0  ;;  %s1195_s24 = scalar_lea.sflag (%p575_p12), [#allocation7], %s2189_s14 }
 0x2bd   : >> { %1419 = vmatmul.mubr.msk.bf16.vlgmr.msra.gmra.mrb[0].mxu0 %vm596_vm4, %v1914_v27  ;;  %1425 = vmatmul.mubr.msk.bf16.vlgmr.msra.gmra.mrb[0].mxu1 %vm596_vm4, %v1919_v31  ;;  %v1340_v27 = vld [vmem:[%s2164_s5] ss:$0 sm:$0xff] (%p575_p12) }
 0x2be   : >> { %1430 = vmatprep.mubr.msk.bf16.mxu0 %vm1753_vm3, %v1752_v40  ;;  %1436 = vmatprep.mubr.msk.bf16.mxu1 %vm1753_vm3, %v1752_v40 }
 0x2bf   : >> { %1429 = vmatpush3.bf16.msra.mxu0 %v737_v62  ;;  %1435 = vmatpush3.bf16.msra.mxu1 %v783_v63  ;;  %v1583_v62 = vld [vmem:[%s2167_s8 + $0x4] ss:$8 sps:$4 sm:$0xff] (%p575_p12)   ;;  %v1586_v63 = vld [vmem:[%s2167_s8 + $0x14] ss:$8 sps:$4 sm:$0xff] (%p575_p12)  }
 0x2c0   : > { %1440 = vmatprep.subr.bf16.mxu1 (%p575_p12), %v1745_v8 }
 0x390   : >> { %v637_v48 = vpop.f32.mrb[0].mxu0  ;;  %v683_v49 = vpop.f32.mrb[0].mxu1 }
 0x391   : >> { %v696_v50 = vsel %vm693_vm5, %v637_v48, -1e+30  ;;  %v1420_v51 = vpop.f32.mrb[1].mxu0  ;;  %v697_v52 = vsel %vm693_vm5, %v683_v49, -1e+30  ;;  %v1426_v53 = vpop.f32.mrb[1].mxu1 }
 0x392   : >> { %v640_v54 = vpop.f32.mrb[2].mxu0  ;;  %v686_v55 = vpop.f32.mrb[2].mxu1  ;;  %v698_v56 = vsel %vm596_vm4, %v696_v50, -inf  ;;  %v701_v59 = vsel %vm596_vm4, %v697_v52, -inf }
 0x393   : >> { %699 = vmax.xlane.f32.xlu0 %v698_v56  ;;  %v1421_v57 = vpop.f32.mrb[3].mxu0  ;;  %v1427_v58 = vpop.f32.mrb[3].mxu1 }
 0x397   : >> { %702 = vmax.xlane.f32.xlu0 %v701_v59 }
 0x420   : >> { %v700_v1 = vpop.xlane.xlu0 %699 }
 0x421   : >> { %v704_v2 = vmax.f32 %v1739_v39, %v700_v1   ;;  %v1584_v1 = vld [vmem:[%s2167_s8 + $0x10] ss:$8 sps:$4 sm:$0xff] (%p575_p12)  }
 0x423   : >> { %v706_v3 = vsub.f32 %v1739_v39, %v704_v2  ;;  %v712_v4 = vsub.f32 %v696_v50, %v704_v2 }
 0x424   : >> { %v703_v5 = vpop.xlane.xlu0 %702 }
 0x425   : >> { %v714_v6 = vmul.f32 1.442695, %v712_v4  ;;  %v705_v7 = vmax.f32 %v1735_v38, %v703_v5   ;;  %v708_v18 = vmul.f32 1.442695, %v706_v3  ;;  %v1587_v3 = vld [vmem:[%s2169_s10 + $0x40] sm:$0xff] (%p575_p12)   ;;  %v1589_v5 = vld [vmem:[%s2169_s10 + $0x48] sm:$0xff] (%p575_p12)  }
 0x426   : > { %v1588_v4 = vld [vmem:[%s2169_s10] sm:$0xff] (%p575_p12)   ;;  %1386 = vmatprep.subr.bf16.mxu0 (%p575_p12), %v1587_v3 }
 0x427   : >> { %v707_v9 = vsub.f32 %v1735_v38, %v705_v7  ;;  %v713_v10 = vsub.f32 %v697_v52, %v705_v7  ;;  %1572 = vpow2.f32 %v714_v6  ;;  %v1590_v6 = vld [vmem:[%s2169_s10 + $0x8] sm:$0xff] (%p575_p12)  }
 0x429   : >> { %v716_v11 = vmul.f32 1.442695, %v713_v10  ;;  %v710_v19 = vmul.f32 1.442695, %v707_v9  ;;  %v1592_v9 = vld [vmem:[%s2169_s10 + $0x10] sm:$0xff] (%p575_p12)   ;;  %v1593_v10 = vld [vmem:[%s2169_s10 + $0x58] sm:$0xff] (%p575_p12)  }
 0x42b   : >> { %1574 = vpow2.f32 %v716_v11  ;;  %v1594_v11 = vld [vmem:[%s2169_s10 + $0x18] sm:$0xff] (%p575_p12)  }
 0x42c   : >> { %1576 = vpow2.f32 %v708_v18 }
 0x42d   : >> { %1578 = vpow2.f32 %v710_v19 }
 0x431   : >> { %v1573_v12 = vpop.eup %1572 }
 0x432   : >> { %v720_v13 = vsel %vm596_vm4, %v1573_v12, 0.0  ;;  %v730_v14 = vpack.c.bf16 %v1573_v12, %v1573_v12  ;;  %v1595_v12 = vld [vmem:[%s2169_s10 + $0x60] sm:$0xff] (%p575_p12)  }
 0x433   : >> { %721 = vadd.xlane.f32.xlu1 %v720_v13  ;;  %v1596_v13 = vld [vmem:[%s2169_s10 + $0x20] sm:$0xff] (%p575_p12)  }
 0x434   : >> { %1431 = vmatmul.mubr.msk.bf16.vlgmr.msra.gmra.mrb[4].mxu0 %vm596_vm4, %v730_v14  ;;  %v1597_v14 = vld [vmem:[%s2169_s10 + $0x68] sm:$0xff] (%p575_p12)  }
 0x435   : >> { %v1575_v15 = vpop.eup %1574  ;;  %1387 = vmatpush3.bf16.msra.mxu0 (%p575_p12), %v1588_v4 }
 0x436   : >> { %v723_v16 = vsel %vm596_vm4, %v1575_v15, 0.0  ;;  %v731_v17 = vpack.c.bf16 %v1575_v15, %v1575_v15  ;;  %v1577_v20 = vpop.eup %1576  ;;  %1388 = vmatprep.subr.bf16.mxu0 (%p575_p12), %v1589_v5  ;;  %v1598_v15 = vld [vmem:[%s2169_s10 + $0x28] sm:$0xff] (%p575_p12)  }
 0x437   : >> { %724 = vadd.xlane.f32.xlu1 %v723_v16  ;;  %v718_v22 = vmul.f32 %v1731_v37, %v1577_v20  ;;  %v1579_v23 = vpop.eup %1578  ;;  %v728_v32 = vmul.f32 %v1723_v35, %v1577_v20  ;;  %v1343_v20 = vld [vmem:[%s2165_s6] ss:$0 sm:$0xff] (%p575_p12) }
 0x438   : >> { %1437 = vmatmul.mubr.msk.bf16.vlgmr.msra.gmra.mrb[4].mxu1 %vm596_vm4, %v731_v17  ;;  %v719_v28 = vmul.f32 %v1727_v36, %v1579_v23  ;;  %v729_v42 = vmul.f32 %v1719_v34, %v1579_v23  ;;  %v1344_v23 = vld [vmem:[%s2166_s7] ss:$0 sm:$0xff] (%p575_p12) }
 0x439   : > { %1442 = vmatprep.mubr.msk.bf16.mxu1 (%p575_p12), %vm1746_vm1, %v1745_v8  ;;  %1441 = vmatpush3.bf16.msra.mxu1 (%p575_p12), %v1580_v47 }
 0x43a   : > { %972 = vmatprep.subr.bf16.mxu1 (%p575_p12), %v1583_v62  ;;  %1389 = vmatpush3.bf16.msra.mxu0 (%p575_p12), %v1590_v6 }
 0x4c0   : >> { %v722_v24 = vpop.xlane.xlu1 %721 }
 0x4c1   : >> { %v726_v26 = vadd.f32 %v722_v24, %v718_v22  }
 0x4c4   : >> { %v725_v29 = vpop.xlane.xlu1 %724 }
 0x4c5   : >> { %v727_v30 = vadd.f32 %v725_v29, %v719_v28   ;;  %v1599_v29 = vld [vmem:[%s2169_s10 + $0x70] sm:$0xff] (%p575_p12)  }
 0x4c7   : >> { %v2183_v36 = vmov %v727_v30  ;;  %1603 = vrcp.f32 (%p575_p12), %v727_v30  ;;  %v1600_v30 = vld [vmem:[%s2169_s10 + $0x30] sm:$0xff] (%p575_p12)  }
 0x4c8   : > { %1605 = vrcp.f32 (%p575_p12), %v726_v26 }
 0x4d1   : > { %v1604_v48 = vpop.eup (%p575_p12), %1603 }
 0x4d2   : > { %v1606_v49 = vpop.eup (%p575_p12), %1605 }
 0x507   : >> { %v773_v33 = vpop.f32.mrb[4].mxu0 }
 0x508   : >> { %v825_v40 = vadd.f32 %v773_v33, %v728_v32   ;;  %v1432_v38 = vpop.f32.mrb[5].mxu0  ;;  %578 = sbr.rel (!%p575_p12) target bundleno = 688 (0x2b0), region = 117  ;;  %v1601_v32 = vld [vmem:[%s2169_s10 + $0x78] sm:$0xff] (%p575_p12)  }
 0x509   : >> { %v776_v39 = vpop.f32.mrb[6].mxu0  ;;  %v2185_v38 = vmov %v705_v7  ;;  %v1591_v7 = vld [vmem:[%s2169_s10 + $0x50] sm:$0xff] (%p575_p12)   ;;  %v1602_v33 = vld [vmem:[%s2169_s10 + $0x38] sm:$0xff] (%p575_p12)  }
 0x50a   : >> { %v1433_v41 = vpop.f32.mrb[7].mxu0  ;;  %v2182_v35 = vmov %v825_v40  ;;  %v2186_v39 = vmov %v704_v2  ;;  %v829_v51 = vmul.f32 (%p575_p12), %v1606_v49, %v825_v40  ;;  %v1755_v2 = vmov (%p575_p12), 0   ;;  %1390 = vmatprep.subr.bf16.mxu0 (%p575_p12), %v1591_v7  ;;  %v937_v38 = vld [vmem:[%s2168_s9] sm:$0x3] (%p575_p12) }
 0x50b   : >> { %v819_v43 = vpop.f32.mrb[4].mxu1  ;;  %1391 = vmatpush3.bf16.msra.mxu0 (%p575_p12), %v1592_v9  ;;  %v941_v40 = vsub.s32 (%p575_p12), 0, %v1911_v25  ;;  %v945_v39 = vsub.s32 (%p575_p12), 1, %v1911_v25  ;;  %v1350_v25 = vld [vmem:[%s2170_s11] ss:$0 sm:$0xff] (%p575_p12) }
 0x50c   : >> { %v826_v44 = vadd.f32 %v819_v43, %v729_v42   ;;  %v1438_v45 = vpop.f32.mrb[5].mxu1  ;;  %v831_v53 = vpack.c.bf16 (%p575_p12), %v829_v51, %v829_v51  ;;  %1392 = vmatprep.subr.bf16.mxu0 (%p575_p12), %v1593_v10 }
 0x50d   : >> { %v822_v37 = vpop.f32.mrb[6].mxu1  ;;  %v942_v41 = vrot.slane (%p575_p12), %v937_v38, %v941_v40  ;;  %v946_v42 = vrot.slane (%p575_p12), %v937_v38, %v945_v39 }
 0x50e   : >> { %v1439_v46 = vpop.f32.mrb[7].mxu1  ;;  %v2181_v34 = vmov %v826_v44  ;;  %v2184_v37 = vmov %v726_v26  ;;  %v830_v50 = vmul.f32 (%p575_p12), %v1604_v48, %v826_v44  ;;  %832 = vst.msk [vmem:[#allocation5] sm:$0xf] (%p575_p12), %vm529_vm2, %v831_v53 }
 0x50f   : > { %1393 = vmatpush3.bf16.msra.mxu0 %v1594_v11 }
 0x510   : > { %v1372_v52 = vpack.c.bf16 %v830_v50, %v830_v50  ;;  %1394 = vmatprep.subr.bf16.mxu0 %v1595_v12 }
 0x512   : > { %837 = vrot.lane.b32.xlu0 %v1372_v52, %s1754_s18  ;;  %s1209_s18 = sshll.u32 %s2187_s27, 4  ;;  %s1613_s27 = sshll.u32 %s1756_s19, 4  ;;  %s2109_s18 = int_to_ptr.vmem [resolvable:$true] %s1209_s18  ;;  %s1614_s27 = int_to_ptr.vmem [resolvable:$false] %s1613_s27 }
 0x513   : > { %1395 = vmatpush3.bf16.msra.mxu0 %v1596_v13  ;;  %s1609_s2 = scalar_lea.vmem %s2109_s18, 128  ;;  %s1615_s20 = scalar_lea.vmem %s1614_s27, 256 }
 0x514   : > { %1396 = vmatprep.subr.bf16.mxu0 %v1597_v14  ;;  %p1610_p13 = scmp.ne.s32.totalorder %s2109_s18, %s1609_s2  ;;  %p1616_p2 = scmp.lt.s32.totalorder %s2109_s18, %s1614_s27 }
 0x515   : > { %p1617_p3 = scmp.lt.s32.totalorder %s1615_s20, %s1609_s2 }
 0x516   : > { %p1611_p0 = pnand %p1610_p13, %p1862_p4 }
 0x517   : > { %1397 = vmatpush3.bf16.msra.mxu0 %v1598_v15  ;;  %p1618_p5 = por %p1617_p3, %p1616_p2 }
 0x518   : > { %1398 = vmatprep.subr.bf16.mxu0 %v1599_v29  ;;  %p1612_p1 = pneg %p1611_p0 }
 0x51a   : > { %p1619_p6 = pnand %p1618_p5, %p1612_p1 }
 0x51b   : > { %1399 = vmatpush3.bf16.msra.mxu0 %v1600_v30 }
 0x51c   : > { %1400 = vmatprep.subr.bf16.mxu0 %v1601_v32 }
 0x51f   : > { %1401 = vmatpush3.bf16.msra.mxu0 %v1602_v33 }
 0x584   : > { %v838_v21 = vpop.permute.xlu0 %837 }
 0x585   : > { %841 = vst.msk [vmem:[#allocation5] sm:$0xf] %vm840_vm7, %v838_v21 }
 0x58c   : > { %v842_v8 = vld [vmem:[#allocation5] sm:$0xf] }
 0x58d   : > { %1443 = vmatmul.mubr.msk.bf16.vlgmr.msra.gmra.mrb[0].mxu1 %vm858_vm8, %v842_v8 }
 0x58e   : > { %1004 = vmatprep.mubr.bf16.mxu1 %v1755_v2 }
 0x660   : > { %v896_v31 = vpop.f32.mrb[0].mxu1 }
 0x661   : > { %v897_v34 = vadd.f32 %v1340_v27, %v896_v31  ;;  %v1444_v35 = vpop.f32.mrb[1].mxu1 }
 0x662   : > { %v899_v36 = vpop.f32.mrb[2].mxu1 }
 0x663   : > { %v2019_v54 = vadd.f32 %v897_v34, %v1882_v0  ;;  %v1445_v55 = vpop.f32.mrb[3].mxu1  ;;  %v1581_v0 = vld [vmem:[%s2167_s8] ss:$8 sps:$4 sm:$0xff]  }
 0x664   : > { %973 = vmatpush1.bf16.msra.mxu1 %v1581_v0 }
 0x665   : > { %v905_v56 = vsel %vm439_vm0, %v2019_v54, 0.0  ;;  %974 = vmatprep.subr.bf16.mxu1 %v1586_v63 }
 0x666   : > { %906 = vadd.xlane.f32.xlu0 %v905_v56 }
 0x668   : > { %975 = vmatpush1.bf16.msra.mxu1 %v1584_v1 }
 0x6f3   : > { %v907_v57 = vpop.xlane.xlu0 %906 }
 0x6f4   : > { %v908_v58 = vmul.f32 0.03125, %v907_v57 }
 0x6f6   : > { %v909_v59 = vsub.f32 %v2019_v54, %v908_v58 }
 0x6f8   : > { %v910_v60 = vmul.f32 %v909_v59, %v909_v59 }
 0x6fa   : > { %v911_v61 = vsel %vm439_vm0, %v910_v60, 0.0 }
 0x6fb   : > { %912 = vadd.xlane.f32.xlu1 %v911_v61 }
 0x788   : > { %v913_v16 = vpop.xlane.xlu1 %912 }
 0x789   : > { %v914_v17 = vmul.f32 0.03125, %v913_v16 }
 0x78b   : > { %v915_v18 = vadd.f32 1e-05, %v914_v17 }
 0x78d   : > { %1607 = vrsqrt.f32 %v915_v18 }
 0x797   : > { %v1608_v19 = vpop.eup %1607 }
 0x798   : > { %v917_v22 = vmul.f32 %v1608_v19, %v909_v59 }
 0x79a   : > { %v924_v24 = vmul.f32 %v1343_v20, %v917_v22 }
 0x79c   : > { %v931_v26 = vadd.f32 %v1344_v23, %v924_v24 }
 0x79e   : > { %v932_v28 = vpack.c.bf16 %v931_v26, %v931_v26 }
 0x7a0   : > { %1349 = vmatmul.mubr.msk.bf16.vlgmr.msra.gmra.mrb[4].mxu1 %vm439_vm0, %v932_v28 }
 0x873   : > { %v1006_v43 = vpop.f32.mrb[4].mxu1 }
 0x874   : > { %v1007_v44 = vadd.f32 %v1006_v43, %v942_v41  ;;  %v1008_v45 = vpop.f32.mrb[5].mxu1 }
 0x875   : > { %v1009_v37 = vadd.f32 %v1008_v45, %v946_v42  ;;  %v1010_v46 = vpop.f32.mrb[6].mxu1 }
 0x876   : > { %v1013_v47 = vmax.f32 %v1007_v44, 0.0  ;;  %v1011_v48 = vpop.f32.mrb[7].mxu1 }
 0x877   : > { %v1014_v49 = vmax.f32 %v1009_v37, 0.0 }
 0x878   : > { %v1015_v51 = vpack.c.bf16 %v1013_v47, %v1013_v47 }
 0x879   : > { %v1016_v50 = vpack.c.bf16 %v1014_v49, %v1014_v49 }
 0x87b   : > { %1184 = vmatprep.mubr.bf16.mxu0 %v1016_v50 }
 0x87c   : > { %1185 = vmatmul.mubr.bf16.vlgmr.msra.gmra.mrb[0].mxu0 %v1015_v51 }
 0x94f   : > { %v1402_v52 = vpop.f32.mrb[0].mxu0 }
 0x950   : > { %v1403_v53 = vpop.f32.mrb[1].mxu0 }
 0x951   : > { %v1404_v21 = vadd.f32 %v1403_v53, %v1402_v52  ;;  %v1405_v8 = vpop.f32.mrb[2].mxu0 }
 0x952   : > { %v1406_v27 = vpop.f32.mrb[3].mxu0 }
 0x953   : > { %v1187_v31 = vadd.f32 %v1404_v21, %v1350_v25 }
 0x955   : > { %v1192_v34 = vadd.f32 %v1187_v31, %v2019_v54 }
 0x957   : > { %1193 = vst.msk [vmem:[%s2188_s0] sm:$0xff] %vm439_vm0, %v1192_v34 }
 0x958   : > { %1622 = shalt.err (!%p1619_p6)
}
 0x959   : > { %s1623_s17 = scalar_lea.hbm %s2107_s28, 128  ;;  %s1627_s0 = scalar_lea.hbm %s2171_s12, 256 }
 0x95a   : > { %p1624_p7 = scmp.ne.s32.totalorder %s2107_s28, %s1623_s17  ;;  %p1628_p11 = scmp.lt.u32.totalorder %s2107_s28, %s2171_s12 }
 0x95b   : > { %p1629_p12 = scmp.lt.u32.totalorder %s1627_s0, %s1623_s17  ;;  %p1631_p0 = scmp.lt.u32.totalorder %s1623_s17, %s2107_s28 }
 0x95c   : > { %p1625_p9 = pnand %p1624_p7, %p1862_p4 }
 0x95d   : > { %p1630_p13 = por %p1629_p12, %p1628_p11 }
 0x95e   : > { %p1626_p10 = pneg %p1625_p9 }
 0x95f   : > { %p1632_p1 = por %p1631_p0, %p1630_p13 }
 0x961   : > { %p1633_p2 = pnand %p1632_p1, %p1626_p10 }
 0x963   : > { %1636 = shalt.err (!%p1633_p2)
}
 0x964   : > { %1446 = dma.vmem_to_hbm [thread:$0]  (%p1862_p4), %s2109_s18, 128, %s2107_s28, %s1195_s24  }
 0x965 PF: > { %p1452_p3 = scmp.ge.s32.totalorder %s1715_s26, 2  ;;  %s1221_s2 = sand.u32 1, %s1695_s21  }
 0x966   : > { %s1222_s27 = scalar_lea.sflag [#allocation7], %s1221_s2 }
 0x967   : > { %p1449_p5 = pnand %p1452_p3, %p1869_p8 }
 0x969   : > { %1690 = dma.done.wait (!%p1449_p5), %s1222_s27, 128  }
 0x96a   : > { %1692 = vsyncadd (!%p1449_p5), %s1222_s27, 4294967168  ;;  %s25_s26 = sadd.s32 1, %s1715_s26   ;;  %s2190_s21 = smov %s1699_s22 }
 0x96b   : > { %p22_p6 = scmp.ge.s32.totalorder %s25_s26, 4   ;;  %s2191_s22 = smov %s1703_s23 }
 0x96c   : > { %s2192_s23 = smov %s1875_s16  ;;  %s2193_s24 = smov %s1711_s25 }
 0x96d   : > { %s2194_s25 = smov %s2196_s29  ;;  %24 = sbr.rel (!%p22_p6) target bundleno = 8 (0x8), region = 128 }
 0x974   :  { %1227 = vsyncpa [#allocation7], 1 }
 0x975   :  { %1229 = vsyncpa [#allocation7 + $0x1], 1 }

</bundles_post_ra>
